<compile_context>
chip_gen: v5e
topology: v5e:2x2
jax: 0.10.0
libtpu: 0.0.40
codegen_flags: <defaults>
</compile_context>

<pallas_src>
import functools

import jax
import jax.numpy as jnp
from jax import lax
from jax.experimental import pallas as pl
from jax.experimental.pallas import tpu as pltpu


def _ntxent_kernel(a_row_ref, p_row_ref, a_col_ref, p_col_ref, out_ref,
                   m_a, s_a, m_p, s_p, *, inv_temp, tm, tn):
    ri = pl.program_id(0)
    cj = pl.program_id(1)

    @pl.when(cj == 0)
    def _init():
        m_a[...] = jnp.full_like(m_a, -jnp.inf)
        m_p[...] = jnp.full_like(m_p, -jnp.inf)
        s_a[...] = jnp.zeros_like(s_a)
        s_p[...] = jnp.zeros_like(s_p)

    a_r = a_row_ref[...]   # [tm, D] anchor rows
    p_r = p_row_ref[...]   # [tm, D] pos rows (same pair indices as a_r)
    a_c = a_col_ref[...]   # [tn, D] anchor cols
    p_c = p_col_ref[...]   # [tn, D] pos cols

    # Contract last dim of both operands -> no explicit transpose / XLU shuffle.
    dn = (((1,), (1,)), ((), ()))
    saa = lax.dot_general(a_r, a_c, dn, preferred_element_type=jnp.float32) * inv_temp
    sap = lax.dot_general(a_r, p_c, dn, preferred_element_type=jnp.float32) * inv_temp
    spa = lax.dot_general(p_r, a_c, dn, preferred_element_type=jnp.float32) * inv_temp
    spp = lax.dot_general(p_r, p_c, dn, preferred_element_type=jnp.float32) * inv_temp

    # Self-similarity exclusion: global diagonal of the AA / PP sub-blocks only.
    grow = lax.broadcasted_iota(jnp.int32, (tm, tn), 0) + ri * tm
    gcol = lax.broadcasted_iota(jnp.int32, (tm, tn), 1) + cj * tn
    diag = grow == gcol
    neg_inf = jnp.float32(-jnp.inf)
    saa = jnp.where(diag, neg_inf, saa)
    spp = jnp.where(diag, neg_inf, spp)

    def _online_lse(m_ref, s_ref, t0, t1):
        m_blk = jnp.maximum(t0.max(axis=1, keepdims=True),
                            t1.max(axis=1, keepdims=True))
        m_new = jnp.maximum(m_ref[...], m_blk)
        scale = jnp.exp(m_ref[...] - m_new)
        s_ref[...] = (s_ref[...] * scale
                      + jnp.exp(t0 - m_new).sum(axis=1, keepdims=True)
                      + jnp.exp(t1 - m_new).sum(axis=1, keepdims=True))
        m_ref[...] = m_new

    _online_lse(m_a, s_a, saa, sap)   # anchor rows: anchors (diag-masked) + positives
    _online_lse(m_p, s_p, spa, spp)   # pos rows:    anchors + positives (diag-masked)

    @pl.when(cj == pl.num_programs(1) - 1)
    def _finalize():
        # Positive logit per pair (identical for anchor row k and pos row k).
        pos_logit = (a_r.astype(jnp.float32) * p_r.astype(jnp.float32)).sum(
            axis=1, keepdims=True) * inv_temp
        # Stabilized log-sum-exp denominator (the reference's +1e-10 inside the log
        # is negligible for any non-degenerate input and is dropped here).
        den_a = m_a[...] + jnp.log(s_a[...])
        den_p = m_p[...] + jnp.log(s_p[...])
        # per-row loss = den - pos_logit; lane dim holds {anchor-half, pos-half}.
        out_ref[...] = jnp.concatenate([den_a - pos_logit, den_p - pos_logit], axis=1)


def _pick_tile(n, pref):
    """Largest convenient tile dividing n (falls back to the full extent)."""
    if n <= pref:
        return n
    for t in (pref, 512, 256, 128, 64, 32, 16, 8):
        if t <= pref and n % t == 0:
            return t
    return n


def ntxent_loss(anchor, pos, temperature: float = 0.1,
                block_rows: int = 256, block_cols: int = 256):
    b, d = anchor.shape
    assert pos.shape == (b, d)
    tm = _pick_tile(b, block_rows)
    tn = _pick_tile(b, block_cols)
    nb_r = b // tm
    nb_c = b // tn

    kernel = functools.partial(
        _ntxent_kernel, inv_temp=float(1.0 / temperature), tm=tm, tn=tn)

    row_losses = pl.pallas_call(
        kernel,
        out_shape=jax.ShapeDtypeStruct((b, 2), jnp.float32),
        grid=(nb_r, nb_c),
        in_specs=[
            pl.BlockSpec((tm, d), lambda ri, cj: (ri, 0)),   # anchor row block
            pl.BlockSpec((tm, d), lambda ri, cj: (ri, 0)),   # pos    row block
            pl.BlockSpec((tn, d), lambda ri, cj: (cj, 0)),   # anchor col block
            pl.BlockSpec((tn, d), lambda ri, cj: (cj, 0)),   # pos    col block
        ],
        out_specs=pl.BlockSpec((tm, 2), lambda ri, cj: (ri, 0)),
        scratch_shapes=[
            pltpu.VMEM((tm, 1), jnp.float32),   # m_a (running max, anchor rows)
            pltpu.VMEM((tm, 1), jnp.float32),   # s_a (running exp-sum, anchor rows)
            pltpu.VMEM((tm, 1), jnp.float32),   # m_p
            pltpu.VMEM((tm, 1), jnp.float32),   # s_p
        ],
        compiler_params=pltpu.CompilerParams(
            dimension_semantics=("parallel", "arbitrary")),
    )(anchor, pos, anchor, pos)

    # loss.view(2, B).mean() == mean over all 2B per-row losses.
    return jnp.mean(row_losses)


def _reference_ntxent(anchor, pos, temperature=0.1):
    """Pure-JAX reference mirroring the PyTorch forward exactly."""
    b = anchor.shape[0]
    emb = jnp.concatenate([anchor, pos], axis=0)
    logits = jnp.matmul(emb, emb.T, precision=lax.Precision.HIGHEST) / temperature
    mask = jnp.tile(jnp.eye(b, dtype=jnp.float32), (2, 2))
    logits_mask = jnp.ones_like(mask) - jnp.eye(2 * b)
    mask = mask * logits_mask
    den = jnp.log((jnp.exp(logits) * logits_mask).sum(1, keepdims=True) + 1e-10)
    num = jnp.log(jnp.exp(logits) + 1e-10)
    log_prob = num - den
    mean_log_prob_pos = (mask * log_prob).sum(1) / mask.sum(1)
    return jnp.mean(-mean_log_prob_pos)


if __name__ == "__main__":
    key = jax.random.PRNGKey(0)
    k1, k2 = jax.random.split(key)
    batch, hidden = 8, 32
    anchor = jax.random.normal(k1, (batch, hidden), dtype=jnp.float32)
    pos = jax.random.normal(k2, (batch, hidden), dtype=jnp.float32)
    # NT-Xent is applied to L2-normalized embeddings; unnormalized random vectors
    # overflow exp() in the (unstabilized) reference formulation and produce NaN.
    anchor = anchor / jnp.linalg.norm(anchor, axis=1, keepdims=True)
    pos = pos / jnp.linalg.norm(pos, axis=1, keepdims=True)

    loss = jax.block_until_ready(ntxent_loss(anchor, pos, temperature=0.1))
    ref = jax.block_until_ready(_reference_ntxent(anchor, pos, temperature=0.1))

    assert jnp.isfinite(loss), loss
    assert jnp.allclose(loss, ref, rtol=1e-4, atol=1e-4), (loss, ref)
    print("KERNEL_OK")
</pallas_src>

<mosaic_0001>
module attributes {stable_mosaic.version = 11 : i64} {
  func.func @_ntxent_kernel(%arg0: i32, %arg1: i32, %arg2: memref<8x32xf32, #tpu.memory_space<vmem>>, %arg3: memref<8x32xf32, #tpu.memory_space<vmem>>, %arg4: memref<8x32xf32, #tpu.memory_space<vmem>>, %arg5: memref<8x32xf32, #tpu.memory_space<vmem>>, %arg6: memref<8x2xf32, #tpu.memory_space<vmem>>, %arg7: memref<8x1xf32, #tpu.memory_space<vmem>>, %arg8: memref<8x1xf32, #tpu.memory_space<vmem>>, %arg9: memref<8x1xf32, #tpu.memory_space<vmem>>, %arg10: memref<8x1xf32, #tpu.memory_space<vmem>>) attributes {dimension_semantics = [#tpu.dimension_semantics<parallel>, #tpu.dimension_semantics<arbitrary>], iteration_bounds = array<i64: 1, 1>, scalar_prefetch = 0 : i64, scratch_operands = 4 : i64, tpu.core_type = #tpu.core_type<tc>, window_params = [{transform_indices = @transform_0, window_bounds = array<i64: 8, 32>}, {transform_indices = @transform_1, window_bounds = array<i64: 8, 32>}, {transform_indices = @transform_2, window_bounds = array<i64: 8, 32>}, {transform_indices = @transform_3, window_bounds = array<i64: 8, 32>}, {transform_indices = @transform_4, window_bounds = array<i64: 8, 2>}]} {
    %c0_i32 = arith.constant 0 : i32
    %0 = arith.cmpi eq, %arg1, %c0_i32 : i32
    %1 = arith.extui %0 : i1 to i32
    %c0_i32_0 = arith.constant 0 : i32
    %2 = arith.cmpi ne, %1, %c0_i32_0 : i32
    scf.if %2 {
      %cst_48 = arith.constant 0xFF800000 : f32
      %87 = vector.broadcast %cst_48 : f32 to vector<8x1xf32>
      %c0_49 = arith.constant 0 : index
      %c0_50 = arith.constant 0 : index
      %88 = vector.load %arg7[%c0_49, %c0_50] : memref<8x1xf32, #tpu.memory_space<vmem>>, vector<8x1xf32>
      tpu.vector_store %arg7[%c0_49, %c0_50], %87 {strides = array<i32>} : memref<8x1xf32, #tpu.memory_space<vmem>>, vector<8x1xf32>,
      %cst_51 = arith.constant 0xFF800000 : f32
      %89 = vector.broadcast %cst_51 : f32 to vector<8x1xf32>
      %c0_52 = arith.constant 0 : index
      %c0_53 = arith.constant 0 : index
      %90 = vector.load %arg9[%c0_52, %c0_53] : memref<8x1xf32, #tpu.memory_space<vmem>>, vector<8x1xf32>
      tpu.vector_store %arg9[%c0_52, %c0_53], %89 {strides = array<i32>} : memref<8x1xf32, #tpu.memory_space<vmem>>, vector<8x1xf32>,
      %cst_54 = arith.constant 0.000000e+00 : f32
      %91 = vector.broadcast %cst_54 : f32 to vector<8x1xf32>
      %c0_55 = arith.constant 0 : index
      %c0_56 = arith.constant 0 : index
      %92 = vector.load %arg8[%c0_55, %c0_56] : memref<8x1xf32, #tpu.memory_space<vmem>>, vector<8x1xf32>
      tpu.vector_store %arg8[%c0_55, %c0_56], %91 {strides = array<i32>} : memref<8x1xf32, #tpu.memory_space<vmem>>, vector<8x1xf32>,
      %cst_57 = arith.constant 0.000000e+00 : f32
      %93 = vector.broadcast %cst_57 : f32 to vector<8x1xf32>
      %c0_58 = arith.constant 0 : index
      %c0_59 = arith.constant 0 : index
      %94 = vector.load %arg10[%c0_58, %c0_59] : memref<8x1xf32, #tpu.memory_space<vmem>>, vector<8x1xf32>
      tpu.vector_store %arg10[%c0_58, %c0_59], %93 {strides = array<i32>} : memref<8x1xf32, #tpu.memory_space<vmem>>, vector<8x1xf32>,
    } else {
    }
    %c0 = arith.constant 0 : index
    %c0_1 = arith.constant 0 : index
    %3 = vector.load %arg2[%c0, %c0_1] : memref<8x32xf32, #tpu.memory_space<vmem>>, vector<8x32xf32>
    %c0_2 = arith.constant 0 : index
    %c0_3 = arith.constant 0 : index
    %4 = vector.load %arg3[%c0_2, %c0_3] : memref<8x32xf32, #tpu.memory_space<vmem>>, vector<8x32xf32>
    %c0_4 = arith.constant 0 : index
    %c0_5 = arith.constant 0 : index
    %5 = vector.load %arg4[%c0_4, %c0_5] : memref<8x32xf32, #tpu.memory_space<vmem>>, vector<8x32xf32>
    %c0_6 = arith.constant 0 : index
    %c0_7 = arith.constant 0 : index
    %6 = vector.load %arg5[%c0_6, %c0_7] : memref<8x32xf32, #tpu.memory_space<vmem>>, vector<8x32xf32>
    %cst = arith.constant dense<0.000000e+00> : vector<8x8xf32>
    %7 = tpu.matmul %3, %5, %cst {dimension_numbers = #tpu.dot_dimension_numbers<[1], [1], [0], [0], [0, 0, 1, 0], [], []>} : vector<8x32xf32>, vector<8x32xf32>, vector<8x8xf32> -> vector<8x8xf32>
    %cst_8 = arith.constant 1.000000e+01 : f32
    %8 = vector.broadcast %cst_8 : f32 to vector<8x8xf32>
    %9 = arith.mulf %7, %8 : vector<8x8xf32>
    %cst_9 = arith.constant dense<0.000000e+00> : vector<8x8xf32>
    %10 = tpu.matmul %3, %6, %cst_9 {dimension_numbers = #tpu.dot_dimension_numbers<[1], [1], [0], [0], [0, 0, 1, 0], [], []>} : vector<8x32xf32>, vector<8x32xf32>, vector<8x8xf32> -> vector<8x8xf32>
    %cst_10 = arith.constant 1.000000e+01 : f32
    %11 = vector.broadcast %cst_10 : f32 to vector<8x8xf32>
    %12 = arith.mulf %10, %11 : vector<8x8xf32>
    %cst_11 = arith.constant dense<0.000000e+00> : vector<8x8xf32>
    %13 = tpu.matmul %4, %5, %cst_11 {dimension_numbers = #tpu.dot_dimension_numbers<[1], [1], [0], [0], [0, 0, 1, 0], [], []>} : vector<8x32xf32>, vector<8x32xf32>, vector<8x8xf32> -> vector<8x8xf32>
    %cst_12 = arith.constant 1.000000e+01 : f32
    %14 = vector.broadcast %cst_12 : f32 to vector<8x8xf32>
    %15 = arith.mulf %13, %14 : vector<8x8xf32>
    %cst_13 = arith.constant dense<0.000000e+00> : vector<8x8xf32>
    %16 = tpu.matmul %4, %6, %cst_13 {dimension_numbers = #tpu.dot_dimension_numbers<[1], [1], [0], [0], [0, 0, 1, 0], [], []>} : vector<8x32xf32>, vector<8x32xf32>, vector<8x8xf32> -> vector<8x8xf32>
    %cst_14 = arith.constant 1.000000e+01 : f32
    %17 = vector.broadcast %cst_14 : f32 to vector<8x8xf32>
    %18 = arith.mulf %16, %17 : vector<8x8xf32>
    %19 = tpu.iota {dimensions = array<i32: 0>} : vector<8x8xi32>
    %c8_i32 = arith.constant 8 : i32
    %20 = arith.muli %arg0, %c8_i32 : i32
    %21 = vector.broadcast %20 : i32 to vector<8x8xi32>
    %22 = arith.addi %19, %21 : vector<8x8xi32>
    %23 = tpu.iota {dimensions = array<i32: 1>} : vector<8x8xi32>
    %c8_i32_15 = arith.constant 8 : i32
    %24 = arith.muli %arg1, %c8_i32_15 : i32
    %25 = vector.broadcast %24 : i32 to vector<8x8xi32>
    %26 = arith.addi %23, %25 : vector<8x8xi32>
    %27 = arith.cmpi eq, %22, %26 : vector<8x8xi32>
    %cst_16 = arith.constant 0xFF800000 : f32
    %28 = vector.broadcast %cst_16 : f32 to vector<8x8xf32>
    %29 = arith.select %27, %28, %9 : vector<8x8xi1>, vector<8x8xf32>
    %cst_17 = arith.constant 0xFF800000 : f32
    %30 = vector.broadcast %cst_17 : f32 to vector<8x8xf32>
    %31 = arith.select %27, %30, %18 : vector<8x8xi1>, vector<8x8xf32>
    %cst_18 = arith.constant dense<0xFF800000> : vector<8xf32>
    %32 = vector.multi_reduction <maximumf>, %29, %cst_18 [1] : vector<8x8xf32> to vector<8xf32>
    %33 = vector.shape_cast %32 : vector<8xf32> to vector<8x1xf32>
    %cst_19 = arith.constant dense<0xFF800000> : vector<8xf32>
    %34 = vector.multi_reduction <maximumf>, %12, %cst_19 [1] : vector<8x8xf32> to vector<8xf32>
    %35 = vector.shape_cast %34 : vector<8xf32> to vector<8x1xf32>
    %36 = arith.maximumf %33, %35 : vector<8x1xf32>
    %c0_20 = arith.constant 0 : index
    %c0_21 = arith.constant 0 : index
    %37 = vector.load %arg7[%c0_20, %c0_21] : memref<8x1xf32, #tpu.memory_space<vmem>>, vector<8x1xf32>
    %38 = arith.maximumf %37, %36 : vector<8x1xf32>
    %c0_22 = arith.constant 0 : index
    %c0_23 = arith.constant 0 : index
    %39 = vector.load %arg7[%c0_22, %c0_23] : memref<8x1xf32, #tpu.memory_space<vmem>>, vector<8x1xf32>
    %40 = arith.subf %39, %38 : vector<8x1xf32>
    %41 = math.exp %40 : vector<8x1xf32>
    %c0_24 = arith.constant 0 : index
    %c0_25 = arith.constant 0 : index
    %42 = vector.load %arg8[%c0_24, %c0_25] : memref<8x1xf32, #tpu.memory_space<vmem>>, vector<8x1xf32>
    %43 = arith.mulf %42, %41 : vector<8x1xf32>
    %44 = vector.broadcast %38 : vector<8x1xf32> to vector<8x8xf32>
    %45 = arith.subf %29, %44 : vector<8x8xf32>
    %46 = math.exp %45 : vector<8x8xf32>
    %cst_26 = arith.constant dense<0.000000e+00> : vector<8xf32>
    %47 = vector.multi_reduction <add>, %46, %cst_26 [1] : vector<8x8xf32> to vector<8xf32>
    %48 = vector.shape_cast %47 : vector<8xf32> to vector<8x1xf32>
    %49 = arith.addf %43, %48 : vector<8x1xf32>
    %50 = vector.broadcast %38 : vector<8x1xf32> to vector<8x8xf32>
    %51 = arith.subf %12, %50 : vector<8x8xf32>
    %52 = math.exp %51 : vector<8x8xf32>
    %cst_27 = arith.constant dense<0.000000e+00> : vector<8xf32>
    %53 = vector.multi_reduction <add>, %52, %cst_27 [1] : vector<8x8xf32> to vector<8xf32>
    %54 = vector.shape_cast %53 : vector<8xf32> to vector<8x1xf32>
    %55 = arith.addf %49, %54 : vector<8x1xf32>
    %c0_28 = arith.constant 0 : index
    %c0_29 = arith.constant 0 : index
    %56 = vector.load %arg8[%c0_28, %c0_29] : memref<8x1xf32, #tpu.memory_space<vmem>>, vector<8x1xf32>
    tpu.vector_store %arg8[%c0_28, %c0_29], %55 {strides = array<i32>} : memref<8x1xf32, #tpu.memory_space<vmem>>, vector<8x1xf32>,
    %c0_30 = arith.constant 0 : index
    %c0_31 = arith.constant 0 : index
    %57 = vector.load %arg7[%c0_30, %c0_31] : memref<8x1xf32, #tpu.memory_space<vmem>>, vector<8x1xf32>
    tpu.vector_store %arg7[%c0_30, %c0_31], %38 {strides = array<i32>} : memref<8x1xf32, #tpu.memory_space<vmem>>, vector<8x1xf32>,
    %cst_32 = arith.constant dense<0xFF800000> : vector<8xf32>
    %58 = vector.multi_reduction <maximumf>, %15, %cst_32 [1] : vector<8x8xf32> to vector<8xf32>
    %59 = vector.shape_cast %58 : vector<8xf32> to vector<8x1xf32>
    %cst_33 = arith.constant dense<0xFF800000> : vector<8xf32>
    %60 = vector.multi_reduction <maximumf>, %31, %cst_33 [1] : vector<8x8xf32> to vector<8xf32>
    %61 = vector.shape_cast %60 : vector<8xf32> to vector<8x1xf32>
    %62 = arith.maximumf %59, %61 : vector<8x1xf32>
    %c0_34 = arith.constant 0 : index
    %c0_35 = arith.constant 0 : index
    %63 = vector.load %arg9[%c0_34, %c0_35] : memref<8x1xf32, #tpu.memory_space<vmem>>, vector<8x1xf32>
    %64 = arith.maximumf %63, %62 : vector<8x1xf32>
    %c0_36 = arith.constant 0 : index
    %c0_37 = arith.constant 0 : index
    %65 = vector.load %arg9[%c0_36, %c0_37] : memref<8x1xf32, #tpu.memory_space<vmem>>, vector<8x1xf32>
    %66 = arith.subf %65, %64 : vector<8x1xf32>
    %67 = math.exp %66 : vector<8x1xf32>
    %c0_38 = arith.constant 0 : index
    %c0_39 = arith.constant 0 : index
    %68 = vector.load %arg10[%c0_38, %c0_39] : memref<8x1xf32, #tpu.memory_space<vmem>>, vector<8x1xf32>
    %69 = arith.mulf %68, %67 : vector<8x1xf32>
    %70 = vector.broadcast %64 : vector<8x1xf32> to vector<8x8xf32>
    %71 = arith.subf %15, %70 : vector<8x8xf32>
    %72 = math.exp %71 : vector<8x8xf32>
    %cst_40 = arith.constant dense<0.000000e+00> : vector<8xf32>
    %73 = vector.multi_reduction <add>, %72, %cst_40 [1] : vector<8x8xf32> to vector<8xf32>
    %74 = vector.shape_cast %73 : vector<8xf32> to vector<8x1xf32>
    %75 = arith.addf %69, %74 : vector<8x1xf32>
    %76 = vector.broadcast %64 : vector<8x1xf32> to vector<8x8xf32>
    %77 = arith.subf %31, %76 : vector<8x8xf32>
    %78 = math.exp %77 : vector<8x8xf32>
    %cst_41 = arith.constant dense<0.000000e+00> : vector<8xf32>
    %79 = vector.multi_reduction <add>, %78, %cst_41 [1] : vector<8x8xf32> to vector<8xf32>
    %80 = vector.shape_cast %79 : vector<8xf32> to vector<8x1xf32>
    %81 = arith.addf %75, %80 : vector<8x1xf32>
    %c0_42 = arith.constant 0 : index
    %c0_43 = arith.constant 0 : index
    %82 = vector.load %arg10[%c0_42, %c0_43] : memref<8x1xf32, #tpu.memory_space<vmem>>, vector<8x1xf32>
    tpu.vector_store %arg10[%c0_42, %c0_43], %81 {strides = array<i32>} : memref<8x1xf32, #tpu.memory_space<vmem>>, vector<8x1xf32>,
    %c0_44 = arith.constant 0 : index
    %c0_45 = arith.constant 0 : index
    %83 = vector.load %arg9[%c0_44, %c0_45] : memref<8x1xf32, #tpu.memory_space<vmem>>, vector<8x1xf32>
    tpu.vector_store %arg9[%c0_44, %c0_45], %64 {strides = array<i32>} : memref<8x1xf32, #tpu.memory_space<vmem>>, vector<8x1xf32>,
    %c0_i32_46 = arith.constant 0 : i32
    %84 = arith.cmpi eq, %arg1, %c0_i32_46 : i32
    %85 = arith.extui %84 : i1 to i32
    %c0_i32_47 = arith.constant 0 : i32
    %86 = arith.cmpi ne, %85, %c0_i32_47 : i32
    scf.if %86 {
      %87 = arith.mulf %3, %4 : vector<8x32xf32>
      %cst_48 = arith.constant dense<0.000000e+00> : vector<8xf32>
      %88 = vector.multi_reduction <add>, %87, %cst_48 [1] : vector<8x32xf32> to vector<8xf32>
      %89 = vector.shape_cast %88 : vector<8xf32> to vector<8x1xf32>
      %cst_49 = arith.constant 1.000000e+01 : f32
      %90 = vector.broadcast %cst_49 : f32 to vector<8x1xf32>
      %91 = arith.mulf %89, %90 : vector<8x1xf32>
      %c0_50 = arith.constant 0 : index
      %c0_51 = arith.constant 0 : index
      %92 = vector.load %arg7[%c0_50, %c0_51] : memref<8x1xf32, #tpu.memory_space<vmem>>, vector<8x1xf32>
      %c0_52 = arith.constant 0 : index
      %c0_53 = arith.constant 0 : index
      %93 = vector.load %arg8[%c0_52, %c0_53] : memref<8x1xf32, #tpu.memory_space<vmem>>, vector<8x1xf32>
      %94 = math.log %93 : vector<8x1xf32>
      %95 = arith.addf %92, %94 : vector<8x1xf32>
      %c0_54 = arith.constant 0 : index
      %c0_55 = arith.constant 0 : index
      %96 = vector.load %arg9[%c0_54, %c0_55] : memref<8x1xf32, #tpu.memory_space<vmem>>, vector<8x1xf32>
      %c0_56 = arith.constant 0 : index
      %c0_57 = arith.constant 0 : index
      %97 = vector.load %arg10[%c0_56, %c0_57] : memref<8x1xf32, #tpu.memory_space<vmem>>, vector<8x1xf32>
      %98 = math.log %97 : vector<8x1xf32>
      %99 = arith.addf %96, %98 : vector<8x1xf32>
      %100 = arith.subf %95, %91 : vector<8x1xf32>
      %101 = arith.subf %99, %91 : vector<8x1xf32>
      %102 = tpu.concatenate %100, %101 in 1 : vector<8x1xf32>, vector<8x1xf32> -> vector<8x2xf32>
      %c0_58 = arith.constant 0 : index
      %c0_59 = arith.constant 0 : index
      %103 = vector.load %arg6[%c0_58, %c0_59] : memref<8x2xf32, #tpu.memory_space<vmem>>, vector<8x2xf32>
      tpu.vector_store %arg6[%c0_58, %c0_59], %102 {strides = array<i32>} : memref<8x2xf32, #tpu.memory_space<vmem>>, vector<8x2xf32>,
    } else {
    }
    return
  }
  func.func @transform_0(%arg0: i32, %arg1: i32) -> (i32, i32) {
    %c0_i32 = arith.constant 0 : i32
    %c0_i32_0 = arith.constant 0 : i32
    return %arg0, %c0_i32 : i32, i32
  }
  func.func @transform_1(%arg0: i32, %arg1: i32) -> (i32, i32) {
    %c0_i32 = arith.constant 0 : i32
    %c0_i32_0 = arith.constant 0 : i32
    return %arg0, %c0_i32 : i32, i32
  }
  func.func @transform_2(%arg0: i32, %arg1: i32) -> (i32, i32) {
    %c0_i32 = arith.constant 0 : i32
    %c0_i32_0 = arith.constant 0 : i32
    return %arg1, %c0_i32 : i32, i32
  }
  func.func @transform_3(%arg0: i32, %arg1: i32) -> (i32, i32) {
    %c0_i32 = arith.constant 0 : i32
    %c0_i32_0 = arith.constant 0 : i32
    return %arg1, %c0_i32 : i32, i32
  }
  func.func @transform_4(%arg0: i32, %arg1: i32) -> (i32, i32) {
    %c0_i32 = arith.constant 0 : i32
    %c0_i32_0 = arith.constant 0 : i32
    return %arg0, %c0_i32 : i32, i32
  }
}

</mosaic_0001>

<bundles_post_ra>
// kernel: tpu_custom_call.1
= control target key start
LH: loop header
LB: loop body
LE: loop exit
PB: predicated region body
PF: predicated region fallthrough
CT: control target
= control target key end

     0   :  { %9 = vsyncpa [#allocation7], 0  ;;  %s511_s0 = inlined_call_operand.hbm [shape: f32[8,32], index: 0, kind: input, shape index: {}]   ;;  %s512_s1 = inlined_call_operand.hbm [shape: f32[8,32], index: 1, kind: input, shape index: {}]   ;;  %s513_s2 = inlined_call_operand.hbm [shape: f32[8,32], index: 2, kind: input, shape index: {}]   ;;  %s514_s3 = inlined_call_operand.hbm [shape: f32[8,32], index: 3, kind: input, shape index: {}]   ;;  %s515_s4 = inlined_call_operand.vmem [shape: f32[8,2], index: 4, kind: output, shape index: {}]  }
   0x1   :  { %10 = vsyncpa [#allocation9], 0  ;;  %s28_s17 = sshll.u32 %s512_s1, 4  ;;  %s29_s17 = int_to_ptr.hbm [resolvable:$true] %s28_s17 }
   0x2   :  { %11 = vsyncpa [#allocation12], 0  ;;  %s437_s18 = smov [#allocation8]   ;;  %s17_s22 = sshll.u32 %s511_s0, 4  ;;  %s18_s22 = int_to_ptr.hbm [resolvable:$true] %s17_s22 }
   0x3   :  { %s30_s19 = sshll.u32 %s437_s18, 4  ;;  %s438_s23 = smov [#allocation6]   ;;  %s31_s19 = int_to_ptr.vmem [resolvable:$true] %s30_s19 }
   0x4   :  { %33 = dma.hbm_to_vmem [thread:$0]  %s29_s17, 128, %s31_s19, [#allocation9]  }
   0x5   :  { %s19_s24 = sshll.u32 %s438_s23, 4  ;;  %s39_s27 = sshll.u32 %s513_s2, 4  ;;  %s20_s24 = int_to_ptr.vmem [resolvable:$true] %s19_s24  ;;  %s40_s27 = int_to_ptr.hbm [resolvable:$true] %s39_s27 }
   0x6   :  { %22 = dma.hbm_to_vmem [thread:$0]  %s18_s22, 128, %s20_s24, [#allocation7]  }
   0x7   :  { %s50_s29 = sshll.u32 %s514_s3, 4  ;;  %s439_s30 = smov [#allocation10]   ;;  %s51_s29 = int_to_ptr.hbm [resolvable:$true] %s50_s29 }
   0x8   :  { %s41_s5 = sshll.u32 %s439_s30, 4  ;;  %s440_s0 = smov [#allocation11]   ;;  %s42_s5 = int_to_ptr.vmem [resolvable:$true] %s41_s5 }
   0x9   :  { %44 = dma.hbm_to_vmem [thread:$0]  %s40_s27, 128, %s42_s5, [#allocation9]  }
   0xa   :  { %s52_s6 = sshll.u32 %s440_s0, 4  ;;  %s53_s6 = int_to_ptr.vmem [resolvable:$true] %s52_s6 }
   0xb   :  { %55 = dma.hbm_to_vmem [thread:$0]  %s51_s29, 128, %s53_s6, [#allocation12]  }
   0xc   :  { %431 = dma.done.wait [#allocation7], 128  }
   0xd   :  { %432 = vsyncadd [#allocation7], 4294967168 }
   0xe   :  { %433 = dma.done.wait [#allocation9], 256  }
   0xf   :  { %434 = vsyncadd [#allocation9], 4294967040 }
  0x10   :  { %435 = dma.done.wait [#allocation12], 128  }
  0x11   :  { %436 = vsyncadd [#allocation12], 4294967168  ;;  %vm85_vm0 = vcmask 261120   ;;  %v83_v0 = vld [vmem:[#allocation10] sm:$0xff]  ;;  %v84_v1 = vld [vmem:[#allocation11] sm:$0xff]  ;;  %v182_v4 = vlaneseq  ;;  %vm195_vm2 = vcmask 64512  }
  0x12   :  { %305 = vmatpush.xpose.msk.msra.mxu2 %vm85_vm0, %v83_v0  ;;  %v82_v2 = vld [vmem:[#allocation8] sm:$0xff]  ;;  %307 = vmatpush.xpose.msk.msra.mxu3 %vm85_vm0, %v84_v1  ;;  %v81_v3 = vld [vmem:[#allocation6] sm:$0xff]  ;;  %vm76_vm3 = vcmask 7168   ;;  %v441_v21 = vmov -inf   ;;  %v442_v22 = vmov 0   ;;  %v443_v23 = vmov 0.0  }
  0x13   :  { %301 = vmatpush.xpose.msk.msra.mxu0 %vm85_vm0, %v83_v0  ;;  %303 = vmatpush.xpose.msk.msra.mxu1 %vm85_vm0, %v84_v1  ;;  %v183_v5 = vshrl.u32 %v182_v4, 7  ;;  %v188_v6 = vand.u32 127, %v182_v4  ;;  %78 = vst.msk [vmem:[#allocation4] sm:$0xff] %vm76_vm3, %v441_v21  ;;  %v270_v36 = vmul.f32 %v82_v2, %v81_v3  ;;  %s444_s2 = smov 1   ;;  %vm292_vm4 = vcmask 15360  }
  0x14   :  { %77 = vst.msk [vmem:[#allocation2] sm:$0xff] %vm76_vm3, %v441_v21  ;;  %317 = vset.pattern.permute.xlu2 %v442_v22  ;;  %318 = vset.pattern.permute.xlu0 %v442_v22 }
  0x15   :  { %306 = vmatmul.msk.f32.vlgmr.msra.gmra.mxu2 %vm85_vm0, %v82_v2  ;;  %308 = vmatmul.msk.f32.vlgmr.msra.gmra.mxu3 %vm85_vm0, %v82_v2  ;;  %vm192_vm1 = vcmp.eq.s32.totalorder %v183_v5, %v188_v6  ;;  %80 = vst.msk [vmem:[#allocation5] sm:$0xff] %vm76_vm3, %v443_v23  ;;  %v271_v37 = vsel %vm85_vm0, %v270_v36, 0.0 }
  0x16   :  { %302 = vmatmul.msk.f32.vlgmr.msra.gmra.mxu0 %vm85_vm0, %v81_v3  ;;  %304 = vmatmul.msk.f32.vlgmr.msra.gmra.mxu1 %vm85_vm0, %v81_v3  ;;  %79 = vst.msk [vmem:[#allocation3] sm:$0xff] %vm76_vm3, %v443_v23 }
  0x1a   :  { %v239_v31 = vld [vmem:[#allocation4] sm:$0xff] }
  0x1b   :  { %v203_v27 = vld [vmem:[#allocation2] sm:$0xff] }
  0x1c   :  { %v244_v59 = vld [vmem:[#allocation5] sm:$0xff] }
  0x1d   :  { %v208_v2 = vld [vmem:[#allocation3] sm:$0xff] }
  0x93   :  { %v109_v7 = vpop.f32.mrf.mxu0  ;;  %v133_v10 = vpop.f32.mrf.mxu1 }
  0x94   :  { %v112_v8 = vmul.f32 10.0, %v109_v7  ;;  %v136_v15 = vmul.f32 10.0, %v133_v10 }
  0x96   :  { %v193_v9 = vsel %vm192_vm1, -inf, %v112_v8  ;;  %v199_v18 = vsel %vm195_vm2, %v136_v15, -inf }
  0x97   :  { %v196_v11 = vsel %vm195_vm2, %v193_v9, -inf }
  0x98   :  { %v157_v12 = vpop.f32.mrf.mxu2  ;;  %v178_v13 = vpop.f32.mrf.mxu3  ;;  %197 = vmax.xlane.f32.xlu1 %v196_v11 }
  0x99   :  { %v160_v14 = vmul.f32 10.0, %v157_v12  ;;  %v181_v16 = vmul.f32 10.0, %v178_v13 }
  0x9b   :  { %v232_v17 = vsel %vm195_vm2, %v160_v14, -inf  ;;  %v194_v19 = vsel %vm192_vm1, -inf, %v181_v16 }
  0x9c   :  { %233 = vmax.xlane.f32.xlu0 %v232_v17  ;;  %v235_v20 = vsel %vm195_vm2, %v194_v19, -inf }
  0xa0   :  { %200 = vmax.xlane.f32.xlu1 %v199_v18 }
  0xa4   :  { %236 = vmax.xlane.f32.xlu0 %v235_v20 }
 0x10b   :  { %v198_v24 = vpop.xlane.xlu1 %197 }
 0x10f   :  { %v234_v25 = vpop.xlane.xlu0 %233 }
 0x113   :  { %v201_v26 = vpop.xlane.xlu1 %200 }
 0x114   :  { %v202_v28 = vmax.f32 %v198_v24, %v201_v26 }
 0x116   :  { %v204_v29 = vmax.f32 %v203_v27, %v202_v28 }
 0x117   :  { %v237_v30 = vpop.xlane.xlu0 %236 }
 0x118   :  { %v238_v32 = vmax.f32 %v234_v25, %v237_v30  ;;  %v205_v33 = vsub.f32 %v203_v27, %v204_v29  ;;  %231 = vst.msk [vmem:[#allocation2] sm:$0xff] %vm76_vm3, %v204_v29 }
 0x11a   :  { %v240_v34 = vmax.f32 %v239_v31, %v238_v32  ;;  %v206_v57 = vmul.f32 1.442695, %v205_v33 }
 0x11c   :  { %v241_v35 = vsub.f32 %v239_v31, %v240_v34  ;;  %266 = vst.msk [vmem:[#allocation4] sm:$0xff] %vm76_vm3, %v240_v34  ;;  %248 = vperm.xlu2 %317, %v240_v34  }
 0x11e   :  { %v242_v56 = vmul.f32 1.442695, %v241_v35 }
 0x123   :  { %v280_v13 = vld [vmem:[#allocation4] sm:$0xff] }
 0x124   :  { %212 = vperm.xlu2 %317, %v204_v29  }
 0x14d   :  { %272 = vadd.xlane.f32.xlu2 %v271_v37 }
 0x176   :  { %v249_v38 = vpop.permute.xlu2 %248 }
 0x177   :  { %v251_v39 = vsub.f32 %v160_v14, %v249_v38  ;;  %v258_v40 = vsub.f32 %v194_v19, %v249_v38  ;;  %v275_v19 = vld [vmem:[#allocation2] sm:$0xff] }
 0x179   :  { %v252_v41 = vmul.f32 1.442695, %v251_v39  ;;  %v259_v42 = vmul.f32 1.442695, %v258_v40 }
 0x17b   :  { %319 = vpow2.f32 %v252_v41 }
 0x17c   :  { %321 = vpow2.f32 %v259_v42 }
 0x17e   :  { %v213_v43 = vpop.permute.xlu2 %212 }
 0x17f   :  { %v215_v44 = vsub.f32 %v193_v9, %v213_v43  ;;  %v222_v45 = vsub.f32 %v136_v15, %v213_v43 }
 0x181   :  { %v320_v46 = vpop.eup %319  ;;  %v216_v47 = vmul.f32 1.442695, %v215_v44  ;;  %v223_v48 = vmul.f32 1.442695, %v222_v45 }
 0x182   :  { %v322_v49 = vpop.eup %321  ;;  %v254_v50 = vsel %vm195_vm2, %v320_v46, 0.0 }
 0x183   :  { %323 = vpow2.f32 %v216_v47  ;;  %v261_v51 = vsel %vm195_vm2, %v322_v49, 0.0  ;;  %255 = vadd.xlane.f32.xlu0 %v254_v50 }
 0x184   :  { %325 = vpow2.f32 %v223_v48  ;;  %262 = vadd.xlane.f32.xlu1 %v261_v51 }
 0x185   :  { %327 = vpow2.f32 %v242_v56 }
 0x186   :  { %329 = vpow2.f32 %v206_v57 }
 0x189   :  { %v324_v52 = vpop.eup %323 }
 0x18a   :  { %v326_v53 = vpop.eup %325  ;;  %v218_v54 = vsel %vm195_vm2, %v324_v52, 0.0 }
 0x18b   :  { %v225_v55 = vsel %vm195_vm2, %v326_v53, 0.0  ;;  %219 = vadd.xlane.f32.xlu0 %v218_v54  ;;  %v328_v58 = vpop.eup %327 }
 0x18c   :  { %226 = vadd.xlane.f32.xlu1 %v225_v55  ;;  %v245_v60 = vmul.f32 %v328_v58, %v244_v59  ;;  %v330_v1 = vpop.eup %329 }
 0x18d   :  { %v209_v3 = vmul.f32 %v330_v1, %v208_v2 }
 0x1c0   :  { %v273_v9 = vpop.xlane.xlu2 %272 }
 0x1c1   :  { %v274_v12 = vmul.f32 10.0, %v273_v9 }
 0x1f6   :  { %v256_v61 = vpop.xlane.xlu0 %255 }
 0x1f7   :  { %v263_v62 = vpop.xlane.xlu1 %262  ;;  %v257_v63 = vadd.f32 %v256_v61, %v245_v60 }
 0x1f9   :  { %v264_v0 = vadd.f32 %v263_v62, %v257_v63 }
 0x1fb   :  { %265 = vst.msk [vmem:[#allocation5] sm:$0xff] %vm76_vm3, %v264_v0 }
 0x1fe   :  { %v220_v4 = vpop.xlane.xlu0 %219 }
 0x1ff   :  { %v221_v5 = vadd.f32 %v220_v4, %v209_v3  ;;  %v227_v6 = vpop.xlane.xlu1 %226 }
 0x201   :  { %v228_v7 = vadd.f32 %v227_v6, %v221_v5 }
 0x202   :  { %v281_v8 = vld [vmem:[#allocation5] sm:$0xff] }
 0x203   :  { %230 = vst.msk [vmem:[#allocation3] sm:$0xff] %vm76_vm3, %v228_v7  ;;  %331 = vlog2.f32 %v281_v8 }
 0x209   :  { %v332_v10 = vpop.eup %331 }
 0x20a   :  { %v283_v11 = vmul.f32 0.6931472, %v332_v10  ;;  %v276_v16 = vld [vmem:[#allocation3] sm:$0xff] }
 0x20b   :  { %333 = vlog2.f32 %v276_v16 }
 0x20c   :  { %v284_v14 = vadd.f32 %v283_v11, %v280_v13 }
 0x20e   :  { %v286_v15 = vsub.f32 %v284_v14, %v274_v12 }
 0x210   :  { %288 = vrot.lane.b32.xlu0 %v286_v15, %s444_s2 }
 0x211   :  { %v334_v17 = vpop.eup %333 }
 0x212   :  { %v278_v18 = vmul.f32 0.6931472, %v334_v17 }
 0x214   :  { %v279_v20 = vadd.f32 %v278_v18, %v275_v19 }
 0x216   :  { %v285_v21 = vsub.f32 %v279_v20, %v274_v12 }
 0x282   :  { %v289_v22 = vpop.permute.xlu0 %288 }
 0x283   :  { %v291_v23 = vsel %vm76_vm3, %v285_v21, %v289_v22 }
 0x284   :  { %293 = vst.msk [vmem:[%s515_s4] sm:$0xff] %vm292_vm4, %v291_v23 }
 0x285   :  { %298 = vsyncpa [#allocation7], 1 }
 0x286   :  { %299 = vsyncpa [#allocation9], 1 }
 0x287   :  { %300 = vsyncpa [#allocation12], 1 }

</bundles_post_ra>
